<compile_context>
chip_gen: v7x
topology: tpu7x:2x2x1
jax: 0.10.0
libtpu: 0.0.40
codegen_flags: <defaults>
</compile_context>

<pallas_src>
import math

import jax
import jax.numpy as jnp
from jax.experimental import pallas as pl
from jax.experimental.pallas import tpu as pltpu


# ---------------------------------------------------------------------------
# Kernel
# ---------------------------------------------------------------------------
def extended_softplus_kernel(x_ref, shift_ref, out_ref, jac_ref):
    x = x_ref[...].astype(jnp.float32)          # (tile_b, tile_f)
    shift = shift_ref[...].astype(jnp.float32)  # (1, tile_f) -- already softplus(param)+0.001

    xm = x - shift
    xp = x + shift

    u = jnp.exp(-jnp.abs(xm))     # exp(-|x - shift|)
    v = jnp.exp(-jnp.abs(xp))     # exp(-|x + shift|)
    lm = jnp.log1p(u)
    lp = jnp.log1p(v)
    sp = jnp.maximum(xm, 0.0) + lm   # softplus(x - shift)
    t = jnp.maximum(xp, 0.0) + lp    # softplus(x + shift)

    # outputs = softplus(x - shift) - softplus(-(x + shift)) = sp + xp - t
    out_ref[...] = (sp + xp - t).astype(out_ref.dtype)

    # diag_jac = log(sigmoid(xm) + sigmoid(-xp))
    #          = log(a*(1+v) + b*(1+u)) - log1p(u) - log1p(v)
    a = jnp.where(xm >= 0.0, 1.0, u)
    b = jnp.where(xp >= 0.0, v, 1.0)
    jac_ref[...] = (jnp.log(a * (1.0 + v) + b * (1.0 + u)) - lm - lp).astype(jac_ref.dtype)


# ---------------------------------------------------------------------------
# Tiling helpers
# ---------------------------------------------------------------------------
def _round_down8(n):
    return (n // 8) * 8


def _vmem_budget_bytes():
    """Budget for the double-buffered tile footprint (3 arrays x 2 buffers x tile)."""
    cap = 64 << 20  # conservative fallback (v7x per-TC physical VMEM)
    try:
        cap = int(pltpu.get_tpu_info().vmem_capacity_bytes)
    except Exception:
        pass
    # v7x (64 MiB physical / TC): keep footprint <= ~24 MiB.
    # v5e/v6e (128 MiB physical):  allow up to ~48 MiB.
    return (24 << 20) if cap <= (64 << 20) else (48 << 20)


def _choose_tiles(b_eff, f_eff, itemsize, budget_bytes):
    """Pick (tile_b, tile_f). Elementwise op -> biggest tiles that fit the budget."""
    per_elem = 3 * 2 * itemsize  # x/out/jac, each double-buffered

    # Feature-axis tiling only if even an 8-row slab of the full width overflows
    # the budget (very wide F). tile_f is then a multiple of 128 (ragged tail ok).
    if 8 * f_eff * per_elem <= budget_bytes:
        tile_f = f_eff
    else:
        tile_f = max(128, ((budget_bytes // (8 * per_elem)) // 128) * 128)

    # Largest batch tile (multiple of 8) fitting the budget; cdiv grid handles the tail.
    max_rows = max(8, _round_down8(budget_bytes // (tile_f * per_elem)))
    if b_eff <= max_rows:
        tile_b = b_eff  # block dim == full array dim is always legal
        # Megacore: guarantee >= 2 batch grid steps so both v7x TensorCores get work.
        if tile_f >= f_eff and b_eff >= 16:
            tile_b = max(8, _round_down8(b_eff // 2))
    else:
        tile_b = max_rows
    return tile_b, tile_f


# ---------------------------------------------------------------------------
# Wrapper
# ---------------------------------------------------------------------------
def extended_softplus(x, shift_param):
    """x: (B, F); shift_param: (1, F) raw parameter. Returns (outputs, diag_jacobian)."""
    B, F = x.shape
    assert shift_param.shape == (1, F)

    # get_shift(): softplus(param) + 0.001 -- once, in plain XLA (not per grid step).
    shift = (jax.nn.softplus(shift_param.astype(jnp.float32)) + 0.001).astype(x.dtype)

    # Lane-dense packing: fold `pack` batch rows into one row so the stored last dim
    # is a multiple of 128 (unmasked vector stores). Valid because shift broadcasts
    # over batch. Batch is zero-padded to a multiple of `pack`; padded rows are
    # computed and discarded.
    pack = 1
    if F % 128 != 0:
        cand = math.lcm(F, 128) // F
        if F * cand <= 16384:  # keep packed rows a sane width
            pack = cand
    B_pad = ((B + pack - 1) // pack) * pack
    x_p = x if B_pad == B else jnp.pad(x, ((0, B_pad - B), (0, 0)))
    B_eff, F_eff = B_pad // pack, F * pack
    x_eff = x_p.reshape(B_eff, F_eff)
    shift_eff = jnp.tile(shift, (1, pack)) if pack > 1 else shift

    itemsize = jnp.dtype(x.dtype).itemsize
    budget = _vmem_budget_bytes()
    tile_b, tile_f = _choose_tiles(B_eff, F_eff, itemsize, budget)
    grid = (pl.cdiv(B_eff, tile_b), pl.cdiv(F_eff, tile_f))

    # Explicit VMEM limit: double-buffered tile footprint + headroom (safe on all gens).
    footprint = 3 * 2 * tile_b * tile_f * itemsize + 2 * tile_f * itemsize
    vmem_limit = int(max(footprint + (8 << 20), 16 << 20))

    out_shape = (
        jax.ShapeDtypeStruct((B_eff, F_eff), x.dtype),
        jax.ShapeDtypeStruct((B_eff, F_eff), x.dtype),
    )

    outputs, diag_jac = pl.pallas_call(
        extended_softplus_kernel,
        out_shape=out_shape,
        grid_spec=pltpu.PrefetchScalarGridSpec(
            num_scalar_prefetch=0,
            grid=grid,
            in_specs=[
                pl.BlockSpec((tile_b, tile_f), lambda i, j: (i, j)),  # x tile
                pl.BlockSpec((1, tile_f), lambda i, j: (0, j)),       # shift (broadcast over batch)
            ],
            out_specs=[
                pl.BlockSpec((tile_b, tile_f), lambda i, j: (i, j)),
                pl.BlockSpec((tile_b, tile_f), lambda i, j: (i, j)),
            ],
        ),
        compiler_params=pltpu.CompilerParams(
            dimension_semantics=("parallel", "parallel"),
            vmem_limit_bytes=vmem_limit,
        ),
    )(x_eff, shift_eff)

    outputs = outputs.reshape(B_pad, F)[:B]
    diag_jac = diag_jac.reshape(B_pad, F)[:B]
    return outputs, diag_jac


# ---------------------------------------------------------------------------
# Pure-JAX reference (mirrors the PyTorch module)
# ---------------------------------------------------------------------------
def extended_softplus_ref(x, shift_param):
    shift = jax.nn.softplus(shift_param) + 0.001
    outputs = jax.nn.softplus(x - shift) - jax.nn.softplus(-(x + shift))
    log_pos = -jnp.logaddexp(shift, x) + x
    log_neg = -jax.nn.softplus(shift + x)
    return outputs, jnp.logaddexp(log_pos, log_neg)


if __name__ == "__main__":
    B, F = 8, 32  # small demo shapes

    # Deterministic parameter init matching torch default: shift = ones(1, features) * 3
    shift_param = jnp.ones((1, F), dtype=jnp.float32) * 3.0

    key = jax.random.PRNGKey(0)
    x = jax.random.normal(key, (B, F), dtype=jnp.float32) * 2.0

    outputs, diag_jac = extended_softplus(x, shift_param)
    jax.block_until_ready((outputs, diag_jac))

    ref_out, ref_jac = extended_softplus_ref(x, shift_param)
    assert outputs.shape == (B, F) and diag_jac.shape == (B, F)
    assert jnp.allclose(outputs, ref_out, atol=1e-5, rtol=1e-5)
    assert jnp.allclose(diag_jac, ref_jac, atol=1e-5, rtol=1e-5)

    print("KERNEL_OK")
</pallas_src>

<mosaic_0001>
module attributes {stable_mosaic.version = 11 : i64} {
  func.func @extended_softplus_kernel(%arg0: i32, %arg1: i32, %arg2: memref<2x128xf32, #tpu.memory_space<vmem>>, %arg3: memref<1x128xf32, #tpu.memory_space<vmem>>, %arg4: memref<2x128xf32, #tpu.memory_space<vmem>>, %arg5: memref<2x128xf32, #tpu.memory_space<vmem>>) attributes {dimension_semantics = [#tpu.dimension_semantics<parallel>, #tpu.dimension_semantics<parallel>], iteration_bounds = array<i64: 1, 1>, scalar_prefetch = 0 : i64, scratch_operands = 0 : i64, tpu.core_type = #tpu.core_type<tc>, window_params = [{transform_indices = @transform_0, window_bounds = array<i64: 2, 128>}, {transform_indices = @transform_1, window_bounds = array<i64: 1, 128>}, {transform_indices = @transform_2, window_bounds = array<i64: 2, 128>}, {transform_indices = @transform_3, window_bounds = array<i64: 2, 128>}]} {
    %c0 = arith.constant 0 : index
    %c0_0 = arith.constant 0 : index
    %0 = vector.load %arg2[%c0, %c0_0] : memref<2x128xf32, #tpu.memory_space<vmem>>, vector<2x128xf32>
    %c0_1 = arith.constant 0 : index
    %c0_2 = arith.constant 0 : index
    %1 = vector.load %arg3[%c0_1, %c0_2] : memref<1x128xf32, #tpu.memory_space<vmem>>, vector<1x128xf32>
    %2 = vector.broadcast %1 : vector<1x128xf32> to vector<2x128xf32>
    %3 = arith.subf %0, %2 : vector<2x128xf32>
    %4 = vector.broadcast %1 : vector<1x128xf32> to vector<2x128xf32>
    %5 = arith.addf %0, %4 : vector<2x128xf32>
    %6 = math.absf %3 : vector<2x128xf32>
    %cst = arith.constant 0.000000e+00 : f32
    %7 = vector.broadcast %cst : f32 to vector<2x128xf32>
    %8 = arith.subf %7, %6 : vector<2x128xf32>
    %9 = math.exp %8 : vector<2x128xf32>
    %10 = math.absf %5 : vector<2x128xf32>
    %cst_3 = arith.constant 0.000000e+00 : f32
    %11 = vector.broadcast %cst_3 : f32 to vector<2x128xf32>
    %12 = arith.subf %11, %10 : vector<2x128xf32>
    %13 = math.exp %12 : vector<2x128xf32>
    %14 = math.log1p %9 : vector<2x128xf32>
    %15 = math.log1p %13 : vector<2x128xf32>
    %cst_4 = arith.constant 0.000000e+00 : f32
    %16 = vector.broadcast %cst_4 : f32 to vector<2x128xf32>
    %17 = arith.maximumf %3, %16 : vector<2x128xf32>
    %18 = arith.addf %17, %14 : vector<2x128xf32>
    %cst_5 = arith.constant 0.000000e+00 : f32
    %19 = vector.broadcast %cst_5 : f32 to vector<2x128xf32>
    %20 = arith.maximumf %5, %19 : vector<2x128xf32>
    %21 = arith.addf %20, %15 : vector<2x128xf32>
    %22 = arith.addf %18, %5 : vector<2x128xf32>
    %23 = arith.subf %22, %21 : vector<2x128xf32>
    %c0_6 = arith.constant 0 : index
    %c0_7 = arith.constant 0 : index
    %24 = vector.load %arg4[%c0_6, %c0_7] : memref<2x128xf32, #tpu.memory_space<vmem>>, vector<2x128xf32>
    tpu.vector_store %arg4[%c0_6, %c0_7], %23 {strides = array<i32>} : memref<2x128xf32, #tpu.memory_space<vmem>>, vector<2x128xf32>,
    %cst_8 = arith.constant 0.000000e+00 : f32
    %25 = vector.broadcast %cst_8 : f32 to vector<2x128xf32>
    %26 = arith.cmpf oge, %3, %25 : vector<2x128xf32>
    %cst_9 = arith.constant 1.000000e+00 : f32
    %27 = vector.broadcast %cst_9 : f32 to vector<2x128xf32>
    %28 = arith.select %26, %27, %9 : vector<2x128xi1>, vector<2x128xf32>
    %cst_10 = arith.constant 0.000000e+00 : f32
    %29 = vector.broadcast %cst_10 : f32 to vector<2x128xf32>
    %30 = arith.cmpf oge, %5, %29 : vector<2x128xf32>
    %cst_11 = arith.constant 1.000000e+00 : f32
    %31 = vector.broadcast %cst_11 : f32 to vector<2x128xf32>
    %32 = arith.select %30, %13, %31 : vector<2x128xi1>, vector<2x128xf32>
    %cst_12 = arith.constant 1.000000e+00 : f32
    %33 = vector.broadcast %cst_12 : f32 to vector<2x128xf32>
    %34 = arith.addf %33, %13 : vector<2x128xf32>
    %35 = arith.mulf %28, %34 : vector<2x128xf32>
    %cst_13 = arith.constant 1.000000e+00 : f32
    %36 = vector.broadcast %cst_13 : f32 to vector<2x128xf32>
    %37 = arith.addf %36, %9 : vector<2x128xf32>
    %38 = arith.mulf %32, %37 : vector<2x128xf32>
    %39 = arith.addf %35, %38 : vector<2x128xf32>
    %40 = math.log %39 : vector<2x128xf32>
    %41 = arith.subf %40, %14 : vector<2x128xf32>
    %42 = arith.subf %41, %15 : vector<2x128xf32>
    %c0_14 = arith.constant 0 : index
    %c0_15 = arith.constant 0 : index
    %43 = vector.load %arg5[%c0_14, %c0_15] : memref<2x128xf32, #tpu.memory_space<vmem>>, vector<2x128xf32>
    tpu.vector_store %arg5[%c0_14, %c0_15], %42 {strides = array<i32>} : memref<2x128xf32, #tpu.memory_space<vmem>>, vector<2x128xf32>,
    return
  }
  func.func @transform_0(%arg0: i32, %arg1: i32) -> (i32, i32) {
    %c0_i32 = arith.constant 0 : i32
    return %arg0, %arg1 : i32, i32
  }
  func.func @transform_1(%arg0: i32, %arg1: i32) -> (i32, i32) {
    %c0_i32 = arith.constant 0 : i32
    %c0_i32_0 = arith.constant 0 : i32
    return %c0_i32, %arg1 : i32, i32
  }
  func.func @transform_2(%arg0: i32, %arg1: i32) -> (i32, i32) {
    %c0_i32 = arith.constant 0 : i32
    return %arg0, %arg1 : i32, i32
  }
  func.func @transform_3(%arg0: i32, %arg1: i32) -> (i32, i32) {
    %c0_i32 = arith.constant 0 : i32
    return %arg0, %arg1 : i32, i32
  }
}

</mosaic_0001>

<bundles_post_ra>
// kernel: tpu_custom_call.1
= control target key start
LH: loop header
LB: loop body
LE: loop exit
PB: predicated region body
PF: predicated region fallthrough
CT: control target
= control target key end

     0   :  { %9 = vsyncpa [#allocation3], 0  ;;  %s261_s0 = inlined_call_operand.hbm [shape: f32[2,128], index: 0, kind: input, shape index: {}]   ;;  %s262_s1 = inlined_call_operand.vmem [shape: f32[1,128], index: 1, kind: input, shape index: {}]   ;;  %s263_s2 = inlined_call_operand.hbm [shape: f32[2,128], index: 2, kind: output, shape index: {0}]   ;;  %s264_s3 = inlined_call_operand.hbm [shape: f32[2,128], index: 3, kind: output, shape index: {1}]  }
   0x1   :  { %10 = vsyncpa [#allocation4], 0 }
   0x2   :  { %11 = vsyncpa [#allocation7], 0  ;;  %s199_s12 = smov [#allocation2]   ;;  %s127_s16 = scalar_lea.hbm %s261_s0, 32 }
   0x3   :  { %s18_s13 = sshll.u32 %s199_s12, 4  ;;  %p128_p0 = scmp.ne.s32.totalorder %s261_s0, %s127_s16  ;;  %s19_s13 = int_to_ptr.vmem [resolvable:$true] %s18_s13 }
   0x4   :  { %p131_p1 = scmp.lt.u32.totalorder %s127_s16, %s261_s0 }
   0x6   :  { %p133_p2 = pnand %p131_p1, %p128_p0 }
   0x8   :  { %136 = shalt.err (!%p133_p2)
}
   0x9   :  { %s137_s21 = scalar_lea.vmem %s19_s13, 32  ;;  %p142_p4 = scmp.lt.s32.totalorder %s19_s13, %s19_s13 }
   0xa   :  { %p138_p3 = scmp.ne.s32.totalorder %s19_s13, %s137_s21  ;;  %p143_p5 = scmp.lt.s32.totalorder %s137_s21, %s137_s21 }
   0xc   :  { %p144_p6 = por %p143_p5, %p142_p4 }
   0xe   :  { %p145_p7 = pnand %p144_p6, %p138_p3 }
  0x10   :  { %148 = shalt.err (!%p145_p7)
}
  0x11   :  { %21 = dma.hbm_to_vmem [thread:$0]  %s261_s0, 32, %s19_s13, [#allocation3]  }
  0x12   :  { %193 = dma.done.wait [#allocation3], 32  }
  0x13   :  { %194 = vsyncadd [#allocation3], 4294967264  ;;  %v27_v0 = vld [vmem:[#allocation2] sm:$0x3]  ;;  %s200_s0 = smov [#allocation5]   ;;  %s201_s26 = smov [#allocation6]  }
  0x14   :  { %v113_v1 = vld [vmem:[%s262_s1] ss:$0 sm:$0xff]  ;;  %s90_s1 = sshll.u32 %s200_s0, 4  ;;  %s100_s27 = sshll.u32 %s201_s26, 4  ;;  %s91_s1 = int_to_ptr.vmem [resolvable:$true] %s90_s1  ;;  %s101_s27 = int_to_ptr.vmem [resolvable:$true] %s100_s27 }
  0x15   :  { %v35_v2 = vsub.f32 %v27_v0, %v113_v1  ;;  %v36_v3 = vadd.f32 %v113_v1, %v27_v0  ;;  %s149_s28 = scalar_lea.vmem %s91_s1, 32  ;;  %p154_p9 = scmp.lt.s32.totalorder %s91_s1, %s91_s1 }
  0x16   :  { %p150_p8 = scmp.ne.s32.totalorder %s91_s1, %s149_s28  ;;  %p155_p10 = scmp.lt.s32.totalorder %s149_s28, %s149_s28 }
  0x17   :  { %v37_v4 = vand.u32 2147483647, %v35_v2  ;;  %v41_v5 = vand.u32 2147483647, %v36_v3  ;;  %vm70_vm0 = vcmp.ge.f32.partialorder %v35_v2, 0.0  ;;  %vm72_vm1 = vcmp.ge.f32.partialorder %v36_v3, 0.0 }
  0x18   :  { %v63_v28 = vmax.f32 %v35_v2, 0.0  ;;  %v65_v31 = vmax.f32 %v36_v3, 0.0  ;;  %p156_p11 = por %p155_p10, %p154_p9 }
  0x19   :  { %v38_v6 = vsub.f32 0.0, %v37_v4  ;;  %v42_v7 = vsub.f32 0.0, %v41_v5 }
  0x1a   :  { %p157_p12 = pnand %p156_p11, %p150_p8 }
  0x1b   :  { %v39_v8 = vmul.f32 1.442695, %v38_v6  ;;  %v43_v9 = vmul.f32 1.442695, %v42_v7 }
  0x1d   :  { %117 = vpow2.f32 %v39_v8 }
  0x1e   :  { %119 = vpow2.f32 %v43_v9 }
  0x27   :  { %v118_v10 = vpop.eup %117 }
  0x28   :  { %v120_v11 = vpop.eup %119  ;;  %v45_v12 = vadd.f32 1.0, %v118_v10  ;;  %v71_v13 = vsel %vm70_vm0, 1.0, %v118_v10  ;;  %v48_v17 = vmul.f32 -0.5, %v118_v10  ;;  %v51_v22 = vand.u32 2147483647, %v118_v10 }
  0x29   :  { %v54_v14 = vadd.f32 1.0, %v120_v11  ;;  %v73_v15 = vsel %vm72_vm1, %v120_v11, 1.0  ;;  %v57_v19 = vmul.f32 -0.5, %v120_v11  ;;  %v60_v24 = vand.u32 2147483647, %v120_v11 }
  0x2a   :  { %121 = vlog2.f32 %v45_v12  ;;  %v77_v16 = vmul.f32 %v73_v15, %v45_v12  ;;  %v49_v21 = vadd.f32 1.0, %v48_v17  ;;  %vm52_vm2 = vcmp.lt.f32.partialorder %v51_v22, 0.0004427343 }
  0x2b   :  { %123 = vlog2.f32 %v54_v14  ;;  %v75_v18 = vmul.f32 %v71_v13, %v54_v14  ;;  %v58_v23 = vadd.f32 1.0, %v57_v19  ;;  %vm61_vm3 = vcmp.lt.f32.partialorder %v60_v24, 0.0004427343 }
  0x2c   :  { %v50_v25 = vmul.f32 %v118_v10, %v49_v21 }
  0x2d   :  { %v78_v20 = vadd.f32 %v77_v16, %v75_v18  ;;  %v59_v27 = vmul.f32 %v120_v11, %v58_v23 }
  0x2f   :  { %125 = vlog2.f32 %v78_v20 }
  0x34   :  { %v122_v26 = vpop.eup %121 }
  0x35   :  { %v124_v29 = vpop.eup %123  ;;  %v47_v30 = vmul.f32 0.6931472, %v122_v26 }
  0x36   :  { %v56_v32 = vmul.f32 0.6931472, %v124_v29 }
  0x37   :  { %v53_v33 = vsel %vm52_vm2, %v50_v25, %v47_v30 }
  0x38   :  { %v62_v34 = vsel %vm61_vm3, %v59_v27, %v56_v32  ;;  %v64_v35 = vadd.f32 %v63_v28, %v53_v33 }
  0x39   :  { %v126_v36 = vpop.eup %125  ;;  %v66_v37 = vadd.f32 %v65_v31, %v62_v34 }
  0x3a   :  { %v67_v38 = vadd.f32 %v64_v35, %v36_v3  ;;  %v80_v39 = vmul.f32 0.6931472, %v126_v36 }
  0x3c   :  { %v68_v40 = vsub.f32 %v67_v38, %v66_v37  ;;  %v81_v41 = vsub.f32 %v80_v39, %v53_v33 }
  0x3e   :  { %69 = vst [vmem:[#allocation5] sm:$0x3] %v68_v40  ;;  %v82_v42 = vsub.f32 %v81_v41, %v62_v34 }
  0x3f   :  { %160 = shalt.err (!%p157_p12)
}
  0x40   :  { %s161_s4 = scalar_lea.hbm %s263_s2, 32 }
  0x41   :  { %p162_p13 = scmp.ne.s32.totalorder %s263_s2, %s161_s4  ;;  %p165_p0 = scmp.lt.u32.totalorder %s161_s4, %s263_s2 }
  0x43   :  { %p167_p1 = pnand %p165_p0, %p162_p13 }
  0x45   :  { %170 = shalt.err (!%p167_p1)
}
  0x46   :  { %93 = dma.vmem_to_hbm [thread:$0]  %s91_s1, 32, %s263_s2, [#allocation4]   ;;  %83 = vst [vmem:[#allocation6] sm:$0x3] %v82_v42 }
  0x47   :  { %s171_s11 = scalar_lea.vmem %s101_s27, 32  ;;  %p176_p3 = scmp.lt.s32.totalorder %s101_s27, %s101_s27 }
  0x48   :  { %p172_p2 = scmp.ne.s32.totalorder %s101_s27, %s171_s11  ;;  %p177_p4 = scmp.lt.s32.totalorder %s171_s11, %s171_s11 }
  0x4a   :  { %p178_p5 = por %p177_p4, %p176_p3 }
  0x4c   :  { %p179_p6 = pnand %p178_p5, %p172_p2 }
  0x4e   :  { %182 = shalt.err (!%p179_p6)
}
  0x4f   :  { %s183_s14 = scalar_lea.hbm %s264_s3, 32 }
  0x50   :  { %p184_p7 = scmp.ne.s32.totalorder %s264_s3, %s183_s14  ;;  %p187_p8 = scmp.lt.u32.totalorder %s183_s14, %s264_s3 }
  0x52   :  { %p189_p9 = pnand %p187_p8, %p184_p7 }
  0x54   :  { %192 = shalt.err (!%p189_p9)
}
  0x55   :  { %103 = dma.vmem_to_hbm [thread:$0]  %s101_s27, 32, %s264_s3, [#allocation7]  }
  0x56   :  { %195 = dma.done.wait [#allocation4], 32  }
  0x57   :  { %196 = vsyncadd [#allocation4], 4294967264 }
  0x58   :  { %197 = dma.done.wait [#allocation7], 32  }
  0x59   :  { %198 = vsyncadd [#allocation7], 4294967264 }
  0x5a   :  { %110 = vsyncpa [#allocation3], 1 }
  0x5b   :  { %111 = vsyncpa [#allocation4], 1 }
  0x5c   :  { %112 = vsyncpa [#allocation7], 1 }

</bundles_post_ra>
